<compile_context>
chip_gen: v7x
topology: tpu7x:2x2x1
jax: 0.10.0
libtpu: 0.0.40
codegen_flags: <defaults>
</compile_context>

<pallas_src>
import functools

import jax
import jax.numpy as jnp
from jax import lax
from jax.experimental import pallas as pl
from jax.experimental.pallas import tpu as pltpu

_HIDDEN = 128      # all hidden layers lane-padded to 128
_ROW_ALIGN = 16    # bf16 sublane packing -> batch tiles are multiples of 16
_TM_CAP = 1024     # large-batch tile cap (amortizes ~0.35us per grid step)


def _round_up(x, m):
    return ((x + m - 1) // m) * m


def _cdiv(a, b):
    return (a + b - 1) // b


def _use_bf16_eltwise_default():
    """bf16 bias+tanh path only on chips with a bf16 VPU/EUP (v6e/v7x)."""
    try:
        kind = jax.devices()[0].device_kind.lower()
    except Exception:
        return False
    return ("v6" in kind) or ("v7" in kind)


def _choose_tm(batch):
    """Batch tile: multiple of 16, <= 1024, and >= 2 tiles when possible."""
    padded = _round_up(max(batch, 1), _ROW_ALIGN)
    if padded <= _ROW_ALIGN:
        return _ROW_ALIGN
    half = _round_up(_cdiv(padded, 2), _ROW_ALIGN)   # >=2 tiles for megacore
    return max(_ROW_ALIGN, min(_TM_CAP, half))


def _critic_kernel(x_ref,
                   w1_ref, b1_ref,
                   w2_ref, b2_ref,
                   w3_ref, b3_ref,
                   w4_ref, b4_ref,
                   o_ref, *, bf16_eltwise):
    """One batch tile: 3 bf16 MXU matmuls + tanh, then a lane-dense head."""
    elt = jnp.bfloat16 if bf16_eltwise else jnp.float32

    def layer(h, w_ref, b_ref):
        acc = jnp.dot(h.astype(jnp.bfloat16), w_ref[...],
                      preferred_element_type=jnp.float32)
        return jnp.tanh(acc.astype(elt) + b_ref[...].astype(elt))

    h = layer(x_ref[...], w1_ref, b1_ref)    # (tm, 128)
    h = layer(h, w2_ref, b2_ref)             # (tm, 128), 64 real + zero pad
    h = layer(h, w3_ref, b3_ref)             # (tm, 128), 32 real + zero pad

    # Lane-dense head: (1, tm) = w4 (1,128) @ h^T (128,tm) on the MXU with f32
    # accumulation (trans-b contraction).  Avoids a masked (tm, 1) store.
    out_row = lax.dot_general(
        w4_ref[...], h.astype(jnp.bfloat16),
        (((1,), (1,)), ((), ())),
        preferred_element_type=jnp.float32)
    out_row = out_row + b4_ref[...]          # (1,1) broadcast over lanes
    o_ref[...] = out_row.reshape(o_ref.shape).astype(o_ref.dtype)


def pack_critic_params(params):
    """Zero-pad hidden dims to 128 lanes, cast matmul weights to bf16."""
    def pad_to(a, shape):
        return jnp.pad(a, [(0, t - s) for s, t in zip(a.shape, shape)])

    return dict(
        w1=params["w1"].astype(jnp.bfloat16),                             # (S,128)
        b1=params["b1"].astype(jnp.float32),                              # (1,128)
        w2=pad_to(params["w2"], (_HIDDEN, _HIDDEN)).astype(jnp.bfloat16),
        b2=pad_to(params["b2"], (1, _HIDDEN)).astype(jnp.float32),
        w3=pad_to(params["w3"], (_HIDDEN, _HIDDEN)).astype(jnp.bfloat16),
        b3=pad_to(params["b3"], (1, _HIDDEN)).astype(jnp.float32),
        w4=pad_to(params["w4"].T, (1, _HIDDEN)).astype(jnp.bfloat16),     # (1,128) row
        b4=params["b4"].astype(jnp.float32),                              # (1,1)
    )


@functools.partial(jax.jit, static_argnames=("tm", "bf16_eltwise"))
def critic_forward(state, packed, tm=None, bf16_eltwise=None):
    """JAX wrapper mimicking Critic.forward.

    state:  (state_dim,) or (batch, state_dim)
    packed: output of pack_critic_params
    returns (batch, 1) float32
    """
    if state.ndim == 1:
        state = state[None, :]                 # same as torch unsqueeze(0)
    batch, state_dim = state.shape
    # bf16 input stream: layer-1 MXU consumes bf16 anyway -> bit-identical,
    # halves the only per-tile HBM read.
    state = state.astype(jnp.bfloat16)

    if bf16_eltwise is None:
        bf16_eltwise = _use_bf16_eltwise_default()

    if tm is None:
        tm = _choose_tm(batch)
    else:
        tm = max(_ROW_ALIGN, _round_up(int(tm), _ROW_ALIGN))  # layout-safe

    padded_batch = _round_up(batch, tm)
    if padded_batch != batch:
        state = jnp.pad(state, ((0, padded_batch - batch), (0, 0)))
    num_tiles = padded_batch // tm

    # Explicit specs. Weights/biases are VMEM-resident across all batch tiles
    # via constant index maps; x / out stream per tile.
    in_specs = [
        pl.BlockSpec((tm, state_dim), lambda i: (i, 0)),
        pl.BlockSpec(packed["w1"].shape, lambda i: (0, 0)),
        pl.BlockSpec(packed["b1"].shape, lambda i: (0, 0)),
        pl.BlockSpec(packed["w2"].shape, lambda i: (0, 0)),
        pl.BlockSpec(packed["b2"].shape, lambda i: (0, 0)),
        pl.BlockSpec(packed["w3"].shape, lambda i: (0, 0)),
        pl.BlockSpec(packed["b3"].shape, lambda i: (0, 0)),
        pl.BlockSpec(packed["w4"].shape, lambda i: (0, 0)),
        pl.BlockSpec(packed["b4"].shape, lambda i: (0, 0)),
    ]

    out = pl.pallas_call(
        functools.partial(_critic_kernel, bf16_eltwise=bf16_eltwise),
        out_shape=jax.ShapeDtypeStruct((num_tiles, 1, tm), jnp.float32),
        grid=(num_tiles,),
        in_specs=in_specs,
        out_specs=pl.BlockSpec((1, 1, tm), lambda i: (i, 0, 0)),  # lane-dense
        compiler_params=pltpu.CompilerParams(
            dimension_semantics=("parallel",),   # megacore shard on v7x
            vmem_limit_bytes=16 << 20),          # actual footprint << limit
    )(state,
      packed["w1"], packed["b1"],
      packed["w2"], packed["b2"],
      packed["w3"], packed["b3"],
      packed["w4"], packed["b4"])

    return out.reshape(padded_batch, 1)[:batch]


def init_critic_params(state_dim, key):
    """Deterministic synthetic parameter init (Kaiming-uniform-ish like torch)."""
    dims = [state_dim, 128, 64, 32, 1]
    params = {}
    for i, (fan_in, fan_out) in enumerate(zip(dims[:-1], dims[1:]), start=1):
        key, kw, kb = jax.random.split(key, 3)
        bound = 1.0 / jnp.sqrt(fan_in)
        # Stored as (in, out) so the kernel does x @ W (torch stores (out, in)).
        params[f"w{i}"] = jax.random.uniform(
            kw, (fan_in, fan_out), jnp.float32, -bound, bound)
        params[f"b{i}"] = jax.random.uniform(
            kb, (1, fan_out), jnp.float32, -bound, bound)
    return params


def critic_reference(state, params):
    """Plain-JAX f32 reference matching the PyTorch module."""
    if state.ndim == 1:
        state = state[None, :]
    h = jnp.tanh(state @ params["w1"] + params["b1"])
    h = jnp.tanh(h @ params["w2"] + params["b2"])
    h = jnp.tanh(h @ params["w3"] + params["b3"])
    return h @ params["w4"] + params["b4"]


def packed_reference(state, packed, bf16_eltwise):
    """Plain-JAX reference with the same bf16/pad numerics as the kernel."""
    if state.ndim == 1:
        state = state[None, :]
    elt = jnp.bfloat16 if bf16_eltwise else jnp.float32
    h = state.astype(jnp.bfloat16)
    for wk, bk in (("w1", "b1"), ("w2", "b2"), ("w3", "b3")):
        acc = jnp.dot(h.astype(jnp.bfloat16), packed[wk],
                      preferred_element_type=jnp.float32)
        h = jnp.tanh(acc.astype(elt) + packed[bk].astype(elt))
    out = lax.dot_general(packed["w4"], h.astype(jnp.bfloat16),
                          (((1,), (1,)), ((), ())),
                          preferred_element_type=jnp.float32)
    return (out + packed["b4"]).T            # (1, batch) -> (batch, 1)


if __name__ == "__main__":
    state_dim = 8
    batch = 4

    key = jax.random.PRNGKey(0)
    key_x, key_p = jax.random.split(key)

    state = jax.random.normal(key_x, (batch, state_dim), jnp.float32)
    params = init_critic_params(state_dim, key_p)
    packed = pack_critic_params(params)

    use_bf16 = _use_bf16_eltwise_default()

    value = jax.block_until_ready(critic_forward(state, packed))
    assert value.shape == (batch, 1), value.shape

    ref_matched = packed_reference(state, packed, use_bf16)  # same numerics
    ref_f32 = critic_reference(state, params)                # original f32 semantics
    assert jnp.allclose(value, ref_matched, atol=3e-2, rtol=3e-2), (value, ref_matched)
    assert jnp.allclose(value, ref_f32, atol=7.5e-2, rtol=0.0), (value, ref_f32)

    # 1-D (single state) path, mirrors torch unsqueeze(0).
    single = jax.block_until_ready(critic_forward(state[0], packed))
    assert single.shape == (1, 1), single.shape
    assert jnp.allclose(single, value[:1], atol=3e-2, rtol=3e-2), (single, value[:1])

    # Multi-tile batch grid path: default tiling splits 20 rows into 2 tiles
    # of 16 (padded), exercising the parallel batch axis.
    big_state = jax.random.normal(key_x, (20, state_dim), jnp.float32)
    big = jax.block_until_ready(critic_forward(big_state, packed))
    assert big.shape == (20, 1), big.shape
    big_ref = critic_reference(big_state, params)
    assert jnp.allclose(big, big_ref, atol=7.5e-2, rtol=0.0), (big, big_ref)

    # User-supplied tm that is not a multiple of 16 gets rounded up safely.
    big2 = jax.block_until_ready(critic_forward(big_state, packed, tm=8))
    assert big2.shape == (20, 1), big2.shape
    assert jnp.allclose(big2, big, atol=3e-2, rtol=3e-2), (big2, big)

    print("KERNEL_OK")
</pallas_src>

<mosaic_0001>
module attributes {stable_mosaic.version = 11 : i64} {
  func.func @_critic_kernel(%arg0: i32, %arg1: memref<16x8xbf16, #tpu.memory_space<vmem>>, %arg2: memref<8x128xbf16, #tpu.memory_space<vmem>>, %arg3: memref<1x128xf32, #tpu.memory_space<vmem>>, %arg4: memref<128x128xbf16, #tpu.memory_space<vmem>>, %arg5: memref<1x128xf32, #tpu.memory_space<vmem>>, %arg6: memref<128x128xbf16, #tpu.memory_space<vmem>>, %arg7: memref<1x128xf32, #tpu.memory_space<vmem>>, %arg8: memref<1x128xbf16, #tpu.memory_space<vmem>>, %arg9: memref<1x1xf32, #tpu.memory_space<vmem>>, %arg10: memref<1x1x16xf32, #tpu.memory_space<vmem>>) attributes {dimension_semantics = [#tpu.dimension_semantics<parallel>], iteration_bounds = array<i64: 1>, scalar_prefetch = 0 : i64, scratch_operands = 0 : i64, tpu.core_type = #tpu.core_type<tc>, window_params = [{transform_indices = @transform_0, window_bounds = array<i64: 16, 8>}, {pipeline_mode = #tpu.pipeline_mode<synchronous>, transform_indices = @transform_1, window_bounds = array<i64: 8, 128>}, {pipeline_mode = #tpu.pipeline_mode<synchronous>, transform_indices = @transform_2, window_bounds = array<i64: 1, 128>}, {pipeline_mode = #tpu.pipeline_mode<synchronous>, transform_indices = @transform_3, window_bounds = array<i64: 128, 128>}, {pipeline_mode = #tpu.pipeline_mode<synchronous>, transform_indices = @transform_4, window_bounds = array<i64: 1, 128>}, {pipeline_mode = #tpu.pipeline_mode<synchronous>, transform_indices = @transform_5, window_bounds = array<i64: 128, 128>}, {pipeline_mode = #tpu.pipeline_mode<synchronous>, transform_indices = @transform_6, window_bounds = array<i64: 1, 128>}, {pipeline_mode = #tpu.pipeline_mode<synchronous>, transform_indices = @transform_7, window_bounds = array<i64: 1, 128>}, {pipeline_mode = #tpu.pipeline_mode<synchronous>, transform_indices = @transform_8, window_bounds = array<i64: 1, 1>}, {transform_indices = @transform_9, window_bounds = array<i64: 1, 1, 16>}]} {
    %c0 = arith.constant 0 : index
    %c0_0 = arith.constant 0 : index
    %0 = vector.load %arg1[%c0, %c0_0] : memref<16x8xbf16, #tpu.memory_space<vmem>>, vector<16x8xbf16>
    %c0_1 = arith.constant 0 : index
    %c0_2 = arith.constant 0 : index
    %1 = vector.load %arg2[%c0_1, %c0_2] : memref<8x128xbf16, #tpu.memory_space<vmem>>, vector<8x128xbf16>
    %cst = arith.constant dense<0.000000e+00> : vector<16x128xf32>
    %2 = tpu.matmul %0, %1, %cst {dimension_numbers = #tpu.dot_dimension_numbers<[1], [0], [0], [1], [0, 0, 1, 1], [], []>} : vector<16x8xbf16>, vector<8x128xbf16>, vector<16x128xf32> -> vector<16x128xf32>
    %c0_3 = arith.constant 0 : index
    %c0_4 = arith.constant 0 : index
    %3 = vector.load %arg3[%c0_3, %c0_4] : memref<1x128xf32, #tpu.memory_space<vmem>>, vector<1x128xf32>
    %4 = vector.broadcast %3 : vector<1x128xf32> to vector<16x128xf32>
    %5 = arith.addf %2, %4 : vector<16x128xf32>
    %6 = math.tanh %5 : vector<16x128xf32>
    %7 = arith.truncf %6 : vector<16x128xf32> to vector<16x128xbf16>
    %c0_5 = arith.constant 0 : index
    %c0_6 = arith.constant 0 : index
    %8 = vector.load %arg4[%c0_5, %c0_6] : memref<128x128xbf16, #tpu.memory_space<vmem>>, vector<128x128xbf16>
    %cst_7 = arith.constant dense<0.000000e+00> : vector<16x128xf32>
    %9 = tpu.matmul %7, %8, %cst_7 {dimension_numbers = #tpu.dot_dimension_numbers<[1], [0], [0], [1], [0, 0, 1, 1], [], []>} : vector<16x128xbf16>, vector<128x128xbf16>, vector<16x128xf32> -> vector<16x128xf32>
    %c0_8 = arith.constant 0 : index
    %c0_9 = arith.constant 0 : index
    %10 = vector.load %arg5[%c0_8, %c0_9] : memref<1x128xf32, #tpu.memory_space<vmem>>, vector<1x128xf32>
    %11 = vector.broadcast %10 : vector<1x128xf32> to vector<16x128xf32>
    %12 = arith.addf %9, %11 : vector<16x128xf32>
    %13 = math.tanh %12 : vector<16x128xf32>
    %14 = arith.truncf %13 : vector<16x128xf32> to vector<16x128xbf16>
    %c0_10 = arith.constant 0 : index
    %c0_11 = arith.constant 0 : index
    %15 = vector.load %arg6[%c0_10, %c0_11] : memref<128x128xbf16, #tpu.memory_space<vmem>>, vector<128x128xbf16>
    %cst_12 = arith.constant dense<0.000000e+00> : vector<16x128xf32>
    %16 = tpu.matmul %14, %15, %cst_12 {dimension_numbers = #tpu.dot_dimension_numbers<[1], [0], [0], [1], [0, 0, 1, 1], [], []>} : vector<16x128xbf16>, vector<128x128xbf16>, vector<16x128xf32> -> vector<16x128xf32>
    %c0_13 = arith.constant 0 : index
    %c0_14 = arith.constant 0 : index
    %17 = vector.load %arg7[%c0_13, %c0_14] : memref<1x128xf32, #tpu.memory_space<vmem>>, vector<1x128xf32>
    %18 = vector.broadcast %17 : vector<1x128xf32> to vector<16x128xf32>
    %19 = arith.addf %16, %18 : vector<16x128xf32>
    %20 = math.tanh %19 : vector<16x128xf32>
    %c0_15 = arith.constant 0 : index
    %c0_16 = arith.constant 0 : index
    %21 = vector.load %arg8[%c0_15, %c0_16] : memref<1x128xbf16, #tpu.memory_space<vmem>>, vector<1x128xbf16>
    %22 = arith.truncf %20 : vector<16x128xf32> to vector<16x128xbf16>
    %cst_17 = arith.constant dense<0.000000e+00> : vector<1x16xf32>
    %23 = tpu.matmul %21, %22, %cst_17 {dimension_numbers = #tpu.dot_dimension_numbers<[1], [1], [0], [0], [0, 0, 1, 0], [], []>} : vector<1x128xbf16>, vector<16x128xbf16>, vector<1x16xf32> -> vector<1x16xf32>
    %c0_18 = arith.constant 0 : index
    %c0_19 = arith.constant 0 : index
    %24 = vector.load %arg9[%c0_18, %c0_19] : memref<1x1xf32, #tpu.memory_space<vmem>>, vector<1x1xf32>
    %25 = vector.broadcast %24 : vector<1x1xf32> to vector<1x16xf32>
    %26 = arith.addf %23, %25 : vector<1x16xf32>
    %27 = vector.shape_cast %26 : vector<1x16xf32> to vector<1x1x16xf32>
    %c0_20 = arith.constant 0 : index
    %c0_21 = arith.constant 0 : index
    %c0_22 = arith.constant 0 : index
    %28 = vector.load %arg10[%c0_20, %c0_21, %c0_22] : memref<1x1x16xf32, #tpu.memory_space<vmem>>, vector<1x1x16xf32>
    tpu.vector_store %arg10[%c0_20, %c0_21, %c0_22], %27 {strides = array<i32>} : memref<1x1x16xf32, #tpu.memory_space<vmem>>, vector<1x1x16xf32>,
    return
  }
  func.func @transform_0(%arg0: i32) -> (i32, i32) {
    %c0_i32 = arith.constant 0 : i32
    %c0_i32_0 = arith.constant 0 : i32
    return %arg0, %c0_i32 : i32, i32
  }
  func.func @transform_1(%arg0: i32) -> (i32, i32) {
    %c0_i32 = arith.constant 0 : i32
    %c0_i32_0 = arith.constant 0 : i32
    %c0_i32_1 = arith.constant 0 : i32
    return %c0_i32, %c0_i32_0 : i32, i32
  }
  func.func @transform_2(%arg0: i32) -> (i32, i32) {
    %c0_i32 = arith.constant 0 : i32
    %c0_i32_0 = arith.constant 0 : i32
    %c0_i32_1 = arith.constant 0 : i32
    return %c0_i32, %c0_i32_0 : i32, i32
  }
  func.func @transform_3(%arg0: i32) -> (i32, i32) {
    %c0_i32 = arith.constant 0 : i32
    %c0_i32_0 = arith.constant 0 : i32
    %c0_i32_1 = arith.constant 0 : i32
    return %c0_i32, %c0_i32_0 : i32, i32
  }
  func.func @transform_4(%arg0: i32) -> (i32, i32) {
    %c0_i32 = arith.constant 0 : i32
    %c0_i32_0 = arith.constant 0 : i32
    %c0_i32_1 = arith.constant 0 : i32
    return %c0_i32, %c0_i32_0 : i32, i32
  }
  func.func @transform_5(%arg0: i32) -> (i32, i32) {
    %c0_i32 = arith.constant 0 : i32
    %c0_i32_0 = arith.constant 0 : i32
    %c0_i32_1 = arith.constant 0 : i32
    return %c0_i32, %c0_i32_0 : i32, i32
  }
  func.func @transform_6(%arg0: i32) -> (i32, i32) {
    %c0_i32 = arith.constant 0 : i32
    %c0_i32_0 = arith.constant 0 : i32
    %c0_i32_1 = arith.constant 0 : i32
    return %c0_i32, %c0_i32_0 : i32, i32
  }
  func.func @transform_7(%arg0: i32) -> (i32, i32) {
    %c0_i32 = arith.constant 0 : i32
    %c0_i32_0 = arith.constant 0 : i32
    %c0_i32_1 = arith.constant 0 : i32
    return %c0_i32, %c0_i32_0 : i32, i32
  }
  func.func @transform_8(%arg0: i32) -> (i32, i32) {
    %c0_i32 = arith.constant 0 : i32
    %c0_i32_0 = arith.constant 0 : i32
    %c0_i32_1 = arith.constant 0 : i32
    return %c0_i32, %c0_i32_0 : i32, i32
  }
  func.func @transform_9(%arg0: i32) -> (i32, i32, i32) {
    %c0_i32 = arith.constant 0 : i32
    %c0_i32_0 = arith.constant 0 : i32
    %c0_i32_1 = arith.constant 0 : i32
    return %arg0, %c0_i32, %c0_i32_0 : i32, i32, i32
  }
}

</mosaic_0001>

<bundles_post_ra>
// kernel: critic_forward.1
= control target key start
LH: loop header
LB: loop body
LE: loop exit
PB: predicated region body
PF: predicated region fallthrough
CT: control target
= control target key end

     0   :  { %s730_s0 = inlined_call_operand.vmem [shape: bf16[16,8], index: 0, kind: input, shape index: {}]   ;;  %s731_s1 = inlined_call_operand.vmem [shape: bf16[8,128], index: 1, kind: input, shape index: {}]   ;;  %s732_s2 = inlined_call_operand.vmem [shape: f32[1,128], index: 2, kind: input, shape index: {}]   ;;  %s733_s3 = inlined_call_operand.hbm [shape: bf16[128,128], index: 3, kind: input, shape index: {}]   ;;  %s734_s4 = inlined_call_operand.vmem [shape: f32[1,128], index: 4, kind: input, shape index: {}]   ;;  %s735_s5 = inlined_call_operand.hbm [shape: bf16[128,128], index: 5, kind: input, shape index: {}]   ;;  %s736_s6 = inlined_call_operand.vmem [shape: f32[1,128], index: 6, kind: input, shape index: {}]   ;;  %s737_s7 = inlined_call_operand.vmem [shape: bf16[1,128], index: 7, kind: input, shape index: {}]   ;;  %s738_s8 = inlined_call_operand.<no memory space> [shape: f32[1,1], index: 8, kind: input, shape index: {}]   ;;  %s739_s9 = inlined_call_operand.vmem [shape: f32[1,1,16], index: 9, kind: output, shape index: {}]  }
   0x1   :  { %v14_v0 = vstv %s738_s8 }
   0x2   :  { %15 = vst [vmem:[#allocation2] sm:$0x1] %v14_v0 }
   0x3   :  { %16 = vsyncpa [#allocation4], 0 }
   0x4   :  { %17 = vsyncpa [#allocation6], 0  ;;  %s599_s11 = smov [#allocation3]   ;;  %s551_s15 = scalar_lea.hbm %s733_s3, 1024 }
   0x5   :  { %s29_s12 = sshll.u32 %s599_s11, 4  ;;  %p552_p0 = scmp.ne.s32.totalorder %s733_s3, %s551_s15  ;;  %s30_s12 = int_to_ptr.vmem [resolvable:$true] %s29_s12 }
   0x6   :  { %p555_p1 = scmp.lt.u32.totalorder %s551_s15, %s733_s3 }
   0x8   :  { %p557_p2 = pnand %p555_p1, %p552_p0 }
   0xa   :  { %560 = shalt.err (!%p557_p2)
}
   0xb   :  { %s561_s8 = scalar_lea.vmem %s30_s12, 1024  ;;  %p566_p4 = scmp.lt.s32.totalorder %s30_s12, %s30_s12 }
   0xc   :  { %p562_p3 = scmp.ne.s32.totalorder %s30_s12, %s561_s8  ;;  %p567_p5 = scmp.lt.s32.totalorder %s561_s8, %s561_s8 }
   0xe   :  { %p568_p6 = por %p567_p5, %p566_p4 }
  0x10   :  { %p569_p7 = pnand %p568_p6, %p562_p3 }
  0x12   :  { %572 = shalt.err (!%p569_p7)
}
  0x13   :  { %s600_s20 = smov 64   ;;  %s601_s21 = smov 4  }
  0x14   :  { %35 = dma.hbm_to_vmem [thread:$0]  %s733_s3, 1024, %s30_s12, [#allocation4], %s600_s20, %s600_s20, %s601_s21  }
  0x15   :  { %s602_s24 = smov [#allocation5]   ;;  %s573_s28 = scalar_lea.hbm %s735_s5, 1024 }
  0x16   :  { %s43_s25 = sshll.u32 %s602_s24, 4  ;;  %p574_p8 = scmp.ne.s32.totalorder %s735_s5, %s573_s28  ;;  %s44_s25 = int_to_ptr.vmem [resolvable:$true] %s43_s25 }
  0x17   :  { %p577_p9 = scmp.lt.u32.totalorder %s573_s28, %s735_s5 }
  0x19   :  { %p579_p10 = pnand %p577_p9, %p574_p8 }
  0x1b   :  { %582 = shalt.err (!%p579_p10)
}
  0x1c   :  { %s583_s13 = scalar_lea.vmem %s44_s25, 1024  ;;  %p588_p12 = scmp.lt.s32.totalorder %s44_s25, %s44_s25 }
  0x1d   :  { %p584_p11 = scmp.ne.s32.totalorder %s44_s25, %s583_s13  ;;  %p589_p13 = scmp.lt.s32.totalorder %s583_s13, %s583_s13 }
  0x1f   :  { %p590_p0 = por %p589_p13, %p588_p12 }
  0x21   :  { %p591_p1 = pnand %p590_p0, %p584_p11 }
  0x23   :  { %594 = shalt.err (!%p591_p1)
}
  0x24   :  { %49 = dma.hbm_to_vmem [thread:$0]  %s735_s5, 1024, %s44_s25, [#allocation6], %s600_s20, %s600_s20, %s601_s21  }
  0x25   :  { %595 = dma.done.wait [#allocation4], 1024  }
  0x26   :  { %596 = vsyncadd [#allocation4], 4294966272 }
  0x27   :  { %597 = dma.done.wait [#allocation6], 1024  }
  0x28   :  { %598 = vsyncadd [#allocation6], 4294966272  ;;  %v603_v1 = vmov 0.0   ;;  %vm604_vm0 = vmmov 0   ;;  %vm82_vm1 = vcmask 1043456   ;;  %v522_v4 = vld [vmem:[%s730_s0] sm:$0xff]   ;;  %v367_v54 = vlaneseq }
  0x29   :  { %462 = vmatprep.subr.bf16.mxu0 %v603_v1  ;;  %464 = vmatprep.mubr.msk.bf16.mxu0 %vm604_vm0, %v603_v1  ;;  %v65_v2 = vld [vmem:[%s731_s1] sm:$0xf]  ;;  %vm78_vm2 = vcmask 64512   ;;  %v524_v6 = vld [vmem:[#allocation3 + $0x8] sm:$0xff]   ;;  %v525_v7 = vld [vmem:[#allocation3 + $0x10] sm:$0xff]   ;;  %v605_v42 = vmov 0  }
  0x2a   :  { %468 = vmatprep.subr.bf16.mxu1 %v603_v1  ;;  %484 = vmatprep.mubr.msk.bf16.mxu1 %vm604_vm0, %v603_v1  ;;  %v84_v3 = vsel %vm82_vm1, %v65_v2, 0  ;;  %v523_v5 = vld [vmem:[#allocation3] sm:$0xff]   ;;  %v526_v8 = vld [vmem:[#allocation3 + $0x18] sm:$0xff]   ;;  %v528_v10 = vld [vmem:[#allocation3 + $0x28] sm:$0xff]   ;;  %v368_v55 = vshrl.u32 %v367_v54, 7  ;;  %vm411_vm3 = vcmask 122880  }
  0x2b   :  { %463 = vmatpush3.bf16.msra.mxu0 %v84_v3  ;;  %469 = vmatpush3.bf16.msra.mxu1 %v523_v5  ;;  %v527_v9 = vld [vmem:[#allocation3 + $0x20] sm:$0xff]   ;;  %v529_v11 = vld [vmem:[#allocation3 + $0x30] sm:$0xff]   ;;  %v530_v12 = vld [vmem:[#allocation3 + $0x38] sm:$0xff]  }
  0x2c   :  { %488 = vmatprep.subr.bf16.mxu0 %v603_v1  ;;  %470 = vmatprep.subr.bf16.mxu1 %v603_v1  ;;  %v531_v13 = vld [vmem:[#allocation5] sm:$0xff]   ;;  %v532_v14 = vld [vmem:[#allocation5 + $0x8] sm:$0xff]   ;;  %v533_v15 = vld [vmem:[#allocation5 + $0x10] sm:$0xff]   ;;  %v369_v56 = vsub.s32 0, %v368_v55 }
  0x2d   :  { %v534_v16 = vld [vmem:[#allocation5 + $0x18] sm:$0xff]   ;;  %v535_v27 = vld [vmem:[#allocation5 + $0x20] sm:$0xff]   ;;  %v536_v28 = vld [vmem:[#allocation5 + $0x28] sm:$0xff]   ;;  %521 = vset.pattern.permute.xlu0 %v605_v42 }
  0x2e   :  { %465 = vmatmul.mubr.msk.bf16.vlgmr.msra.gmra.mrb[0].mxu0 %vm78_vm2, %v522_v4  ;;  %v419_v17 = vld [vmem:[%s732_s2] ss:$0 sm:$0xff]  ;;  %v537_v29 = vld [vmem:[#allocation5 + $0x30] sm:$0xff]  }
  0x2f   :  { %504 = vmatprep.mubr.msk.bf16.mxu0 %vm604_vm0, %v603_v1  ;;  %471 = vmatpush3.bf16.msra.mxu1 %v524_v6  ;;  %v538_v30 = vld [vmem:[#allocation5 + $0x38] sm:$0xff]  }
  0x30   :  { %472 = vmatprep.subr.bf16.mxu1 %v603_v1  ;;  %489 = vmatpush3.bf16.msra.mxu0 %v531_v13  ;;  %v422_v31 = vld [vmem:[%s734_s4] ss:$0 sm:$0xff] }
  0x31   :  { %490 = vmatprep.subr.bf16.mxu0 %v603_v1  ;;  %v361_v41 = vld [vmem:[#allocation2] sm:$0x1] }
  0x32   :  { %364 = vperm.xlu0 %521, %v361_v41   ;;  %v431_v43 = vld [vmem:[%s736_s6] ss:$0 sm:$0xff] }
  0x33   :  { %473 = vmatpush3.bf16.msra.mxu1 %v525_v7  ;;  %v359_v53 = vld [vmem:[%s737_s7] sm:$0x1] }
  0x34   :  { %474 = vmatprep.subr.bf16.mxu1 %v603_v1  ;;  %491 = vmatpush3.bf16.msra.mxu0 %v532_v14 }
  0x35   :  { %492 = vmatprep.subr.bf16.mxu0 %v603_v1 }
  0x37   :  { %475 = vmatpush3.bf16.msra.mxu1 %v526_v8 }
  0x38   :  { %476 = vmatprep.subr.bf16.mxu1 %v603_v1  ;;  %493 = vmatpush3.bf16.msra.mxu0 %v533_v15 }
  0x39   :  { %494 = vmatprep.subr.bf16.mxu0 %v603_v1 }
  0x3b   :  { %477 = vmatpush3.bf16.msra.mxu1 %v527_v9 }
  0x3c   :  { %478 = vmatprep.subr.bf16.mxu1 %v603_v1  ;;  %495 = vmatpush3.bf16.msra.mxu0 %v534_v16 }
  0x3d   :  { %496 = vmatprep.subr.bf16.mxu0 %v603_v1 }
  0x3f   :  { %479 = vmatpush3.bf16.msra.mxu1 %v528_v10 }
  0x40   :  { %480 = vmatprep.subr.bf16.mxu1 %v603_v1  ;;  %497 = vmatpush3.bf16.msra.mxu0 %v535_v27 }
  0x41   :  { %498 = vmatprep.subr.bf16.mxu0 %v603_v1 }
  0x43   :  { %481 = vmatpush3.bf16.msra.mxu1 %v529_v11 }
  0x44   :  { %482 = vmatprep.subr.bf16.mxu1 %v603_v1  ;;  %499 = vmatpush3.bf16.msra.mxu0 %v536_v28 }
  0x45   :  { %500 = vmatprep.subr.bf16.mxu0 %v603_v1 }
  0x47   :  { %483 = vmatpush3.bf16.msra.mxu1 %v530_v12 }
  0x48   :  { %508 = vmatprep.subr.bf16.mxu1 %v603_v1  ;;  %501 = vmatpush3.bf16.msra.mxu0 %v537_v29 }
  0x49   :  { %502 = vmatprep.subr.bf16.mxu0 %v603_v1 }
  0x4c   :  { %503 = vmatpush3.bf16.msra.mxu0 %v538_v30 }
  0xb1   :  { %v365_v57 = vpop.permute.xlu0 %364 }
  0xb2   :  { %v370_v58 = vrot.slane %v365_v57, %v369_v56 }
 0x101   :  { %v120_v18 = vpop.f32.mrb[0].mxu0 }
 0x102   :  { %v121_v19 = vadd.f32 %v419_v17, %v120_v18  ;;  %v466_v20 = vpop.f32.mrb[1].mxu0 }
 0x103   :  { %v123_v21 = vpop.f32.mrb[2].mxu0 }
 0x104   :  { %v124_v22 = vadd.f32 %v419_v17, %v123_v21  ;;  %v467_v23 = vpop.f32.mrb[3].mxu0  ;;  %539 = vtanh.f32 %v121_v19 }
 0x106   :  { %541 = vtanh.f32 %v124_v22 }
 0x10e   :  { %v540_v24 = vpop.eup %539 }
 0x110   :  { %v542_v25 = vpop.eup %541 }
 0x111   :  { %v129_v26 = vpack.c.bf16 %v542_v25, %v540_v24 }
 0x113   :  { %485 = vmatmul.mubr.bf16.vlgmr.msra.gmra.mrb[0].mxu1 %v129_v26 }
 0x114   :  { %510 = vmatprep.mubr.msk.bf16.mxu1 %vm604_vm0, %v603_v1 }
 0x1e6   :  { %v235_v32 = vpop.f32.mrb[0].mxu1 }
 0x1e7   :  { %v236_v33 = vadd.f32 %v422_v31, %v235_v32  ;;  %v486_v34 = vpop.f32.mrb[1].mxu1 }
 0x1e8   :  { %v238_v35 = vpop.f32.mrb[2].mxu1 }
 0x1e9   :  { %v239_v36 = vadd.f32 %v422_v31, %v238_v35  ;;  %v487_v37 = vpop.f32.mrb[3].mxu1  ;;  %543 = vtanh.f32 %v236_v33 }
 0x1eb   :  { %545 = vtanh.f32 %v239_v36 }
 0x1f3   :  { %v544_v38 = vpop.eup %543 }
 0x1f5   :  { %v546_v39 = vpop.eup %545 }
 0x1f6   :  { %v244_v40 = vpack.c.bf16 %v546_v39, %v544_v38 }
 0x1f8   :  { %505 = vmatmul.mubr.bf16.vlgmr.msra.gmra.mrb[4].mxu0 %v244_v40 }
 0x2cb   :  { %v350_v44 = vpop.f32.mrb[4].mxu0 }
 0x2cc   :  { %v351_v45 = vadd.f32 %v431_v43, %v350_v44  ;;  %v506_v46 = vpop.f32.mrb[5].mxu0 }
 0x2cd   :  { %v353_v47 = vpop.f32.mrb[6].mxu0 }
 0x2ce   :  { %v354_v48 = vadd.f32 %v431_v43, %v353_v47  ;;  %v507_v49 = vpop.f32.mrb[7].mxu0  ;;  %547 = vtanh.f32 %v351_v45 }
 0x2d0   :  { %549 = vtanh.f32 %v354_v48 }
 0x2d8   :  { %v548_v50 = vpop.eup %547 }
 0x2da   :  { %v550_v51 = vpop.eup %549 }
 0x2db   :  { %v360_v52 = vpack.c.bf16 %v550_v51, %v548_v50 }
 0x2dd   :  { %509 = vmatpush3.bf16.xpose.msra.mxu1 %v360_v52 }
 0x2e4   :  { %511 = vmatmul.mubr.bf16.vlgmr.msra.gmra.mrb[4].mxu1 %v359_v53 }
 0x3b7   :  { %v405_v59 = vpop.f32.mrb[4].mxu1 }
 0x3b8   :  { %v406_v60 = vadd.f32 %v405_v59, %v370_v58  ;;  %v512_v61 = vpop.f32.mrb[5].mxu1 }
 0x3b9   :  { %v408_v62 = vpop.f32.mrb[6].mxu1 }
 0x3ba   :  { %412 = vst.msk [vmem:[%s739_s9] sm:$0x1] %vm411_vm3, %v406_v60  ;;  %v513_v63 = vpop.f32.mrb[7].mxu1 }
 0x3bb   :  { %417 = vsyncpa [#allocation4], 1 }
 0x3bc   :  { %418 = vsyncpa [#allocation6], 1 }

</bundles_post_ra>
